<compile_context>
chip_gen: v7x
topology: tpu7x:2x2x1
jax: 0.10.0
libtpu: 0.0.40
codegen_flags: <defaults>
</compile_context>

<pallas_src>
import functools
import math

import jax
import jax.numpy as jnp
from jax import lax
from jax.experimental import pallas as pl
from jax.experimental.pallas import tpu as pltpu

IN_FEATURES = 48
HEAD_DIM = 8


def ultimus_kernel(x_ref, wkqv_ref, bkqv_ref, wo_ref, bo_ref, o_ref, *,
                   query_tile, compute_dtype):
    scale = 1.0 / math.sqrt(float(HEAD_DIM))
    batch = x_ref.shape[0]

    x = x_ref[...].astype(compute_dtype)                       # [B, 48]

    # Single fused K|Q|V projection over the full batch: one MXU push,
    # f32 accumulate.  Columns: [0:8] = K, [8:16] = Q, [16:24] = V.
    kqv = jnp.dot(x, wkqv_ref[...].astype(compute_dtype),
                  preferred_element_type=jnp.float32) + bkqv_ref[...]   # [B, 24]
    xk_full = kqv[:, :HEAD_DIM] * scale   # fold 1/sqrt(d) into the tiny K slab
    xq = kqv[:, HEAD_DIM:2 * HEAD_DIM]                          # [B, 8]
    xv = kqv[:, 2 * HEAD_DIM:]                                  # [B, 8]

    if query_tile == batch:
        # grid == 1 (typical here): no slicing needed at all.
        xk = xk_full                                            # [TQ, 8]
    else:
        q0 = pl.multiple_of(pl.program_id(0) * query_tile, query_tile)
        xk = lax.dynamic_slice_in_dim(xk_full, q0, query_tile, axis=0)

    # Scores: contract the feature axis directly (no materialized xq.T).
    scores = lax.dot_general(
        xk.astype(compute_dtype), xq.astype(compute_dtype),
        dimension_numbers=(((1,), (1,)), ((), ())),
        preferred_element_type=jnp.float32)                     # [TQ, B]

    # Row-wise, numerically stable softmax (matches F.softmax default dim=1
    # for a 2-D input).
    m = jnp.max(scores, axis=-1, keepdims=True)
    e = jnp.exp(scores - m)
    denom = jnp.sum(e, axis=-1, keepdims=True)
    p = e * pl.reciprocal(denom, approx=True)                   # EUP vrcp

    # Weighted values and output projection.
    z = jnp.dot(p.astype(compute_dtype), xv.astype(compute_dtype),
                preferred_element_type=jnp.float32)             # [TQ, 8]
    out = jnp.dot(z.astype(compute_dtype), wo_ref[...].astype(compute_dtype),
                  preferred_element_type=jnp.float32) + bo_ref[...]
    o_ref[...] = out.astype(o_ref.dtype)


def _pick_query_tile(B):
    """Largest tile satisfying the (8, 128) block constraint and dividing B."""
    if B <= 512:
        return B
    for t in (512, 256, 128, 64, 32, 16, 8):
        if B % t == 0:
            return t
    return B


def ultimus_forward(x, params, *, use_bf16=False):
    """x: [B, 48] float32. params: dict from init_params."""
    B = x.shape[0]
    wkqv, bkqv = params["wkqv"], params["bkqv"]
    wo, bo = params["wo"], params["bo"]

    tq = _pick_query_tile(B)
    grid = (pl.cdiv(B, tq),)
    compute_dtype = jnp.bfloat16 if use_bf16 else jnp.float32

    full = lambda shape: pl.BlockSpec(shape, lambda i: (0,) * len(shape))

    kernel = functools.partial(ultimus_kernel, query_tile=tq,
                               compute_dtype=compute_dtype)

    return pl.pallas_call(
        kernel,
        out_shape=jax.ShapeDtypeStruct((B, IN_FEATURES), jnp.float32),
        grid=grid,
        in_specs=[
            full((B, IN_FEATURES)),      # x: constant block index -> DMA'd once
            full(wkqv.shape), full(bkqv.shape),
            full(wo.shape), full(bo.shape),
        ],
        out_specs=pl.BlockSpec((tq, IN_FEATURES), lambda i: (i, 0)),
        compiler_params=pltpu.CompilerParams(
            dimension_semantics=("parallel",)),
    )(x, wkqv, bkqv, wo, bo)


def init_params(key):
    """PyTorch-style init: U(-1/sqrt(fan_in), 1/sqrt(fan_in)).

    Weights stored [in_features, out_features] (y = x @ W + b).  K, Q and V
    are packed side by side into one [48, 24] weight / [1, 24] bias so the
    kernel does a single fused projection for all three.
    """
    ks = jax.random.split(key, 8)

    def linear(kw, kb, fan_in, fan_out):
        bound = 1.0 / math.sqrt(fan_in)
        w = jax.random.uniform(kw, (fan_in, fan_out), jnp.float32, -bound, bound)
        b = jax.random.uniform(kb, (1, fan_out), jnp.float32, -bound, bound)
        return w, b

    wk, bk = linear(ks[0], ks[1], IN_FEATURES, HEAD_DIM)
    wq, bq = linear(ks[2], ks[3], IN_FEATURES, HEAD_DIM)
    wv, bv = linear(ks[4], ks[5], IN_FEATURES, HEAD_DIM)
    wo, bo = linear(ks[6], ks[7], HEAD_DIM, IN_FEATURES)
    return dict(
        wkqv=jnp.concatenate([wk, wq, wv], axis=1),   # [48, 24] = [K | Q | V]
        bkqv=jnp.concatenate([bk, bq, bv], axis=1),   # [1, 24]
        wo=wo, bo=bo,
    )


def ultimus_reference(x, p):
    """Pure-JAX reference with identical semantics (sanity check)."""
    xk = x @ p["wkqv"][:, :HEAD_DIM] + p["bkqv"][:, :HEAD_DIM]
    xq = x @ p["wkqv"][:, HEAD_DIM:2 * HEAD_DIM] + p["bkqv"][:, HEAD_DIM:2 * HEAD_DIM]
    xv = x @ p["wkqv"][:, 2 * HEAD_DIM:] + p["bkqv"][:, 2 * HEAD_DIM:]
    am = jax.nn.softmax((xk @ xq.T) / math.sqrt(HEAD_DIM), axis=-1)
    z = am @ xv
    return z @ p["wo"] + p["bo"]


if __name__ == "__main__":
    key = jax.random.PRNGKey(0)
    k_params, k_x = jax.random.split(key)

    B = 8  # small batch (attention mixes over the batch axis)
    params = init_params(k_params)
    x = jax.random.normal(k_x, (B, IN_FEATURES), dtype=jnp.float32)

    out = ultimus_forward(x, params)           # f32 MXU path (demo default)
    out = jax.block_until_ready(out)

    ref = ultimus_reference(x, params)
    assert out.shape == (B, IN_FEATURES)
    # Tolerance relaxed slightly for the approx-reciprocal softmax denominator.
    assert jnp.allclose(out, ref, atol=2e-3, rtol=2e-3), "mismatch vs JAX reference"

    print("KERNEL_OK")
</pallas_src>

<mosaic_0001>
module attributes {stable_mosaic.version = 11 : i64} {
  func.func @ultimus_kernel(%arg0: i32, %arg1: memref<8x48xf32, #tpu.memory_space<vmem>>, %arg2: memref<48x24xf32, #tpu.memory_space<vmem>>, %arg3: memref<1x24xf32, #tpu.memory_space<vmem>>, %arg4: memref<8x48xf32, #tpu.memory_space<vmem>>, %arg5: memref<1x48xf32, #tpu.memory_space<vmem>>, %arg6: memref<8x48xf32, #tpu.memory_space<vmem>>) attributes {dimension_semantics = [#tpu.dimension_semantics<parallel>], iteration_bounds = array<i64: 1>, scalar_prefetch = 0 : i64, scratch_operands = 0 : i64, tpu.core_type = #tpu.core_type<tc>, window_params = [{pipeline_mode = #tpu.pipeline_mode<synchronous>, transform_indices = @transform_0, window_bounds = array<i64: 8, 48>}, {pipeline_mode = #tpu.pipeline_mode<synchronous>, transform_indices = @transform_1, window_bounds = array<i64: 48, 24>}, {pipeline_mode = #tpu.pipeline_mode<synchronous>, transform_indices = @transform_2, window_bounds = array<i64: 1, 24>}, {pipeline_mode = #tpu.pipeline_mode<synchronous>, transform_indices = @transform_3, window_bounds = array<i64: 8, 48>}, {pipeline_mode = #tpu.pipeline_mode<synchronous>, transform_indices = @transform_4, window_bounds = array<i64: 1, 48>}, {transform_indices = @transform_5, window_bounds = array<i64: 8, 48>}]} {
    %c0 = arith.constant 0 : index
    %c0_0 = arith.constant 0 : index
    %0 = vector.load %arg1[%c0, %c0_0] : memref<8x48xf32, #tpu.memory_space<vmem>>, vector<8x48xf32>
    %c0_1 = arith.constant 0 : index
    %c0_2 = arith.constant 0 : index
    %1 = vector.load %arg2[%c0_1, %c0_2] : memref<48x24xf32, #tpu.memory_space<vmem>>, vector<48x24xf32>
    %cst = arith.constant dense<0.000000e+00> : vector<8x24xf32>
    %2 = tpu.matmul %0, %1, %cst {dimension_numbers = #tpu.dot_dimension_numbers<[1], [0], [0], [1], [0, 0, 1, 1], [], []>} : vector<8x48xf32>, vector<48x24xf32>, vector<8x24xf32> -> vector<8x24xf32>
    %c0_3 = arith.constant 0 : index
    %c0_4 = arith.constant 0 : index
    %3 = vector.load %arg3[%c0_3, %c0_4] : memref<1x24xf32, #tpu.memory_space<vmem>>, vector<1x24xf32>
    %4 = vector.broadcast %3 : vector<1x24xf32> to vector<8x24xf32>
    %5 = arith.addf %2, %4 : vector<8x24xf32>
    %6 = vector.extract_strided_slice %5 {offsets = [0, 0], sizes = [8, 8], strides = [1, 1]} : vector<8x24xf32> to vector<8x8xf32>
    %cst_5 = arith.constant 0.353553385 : f32
    %7 = vector.broadcast %cst_5 : f32 to vector<8x8xf32>
    %8 = arith.mulf %6, %7 : vector<8x8xf32>
    %9 = vector.extract_strided_slice %5 {offsets = [0, 8], sizes = [8, 8], strides = [1, 1]} : vector<8x24xf32> to vector<8x8xf32>
    %10 = vector.extract_strided_slice %5 {offsets = [0, 16], sizes = [8, 8], strides = [1, 1]} : vector<8x24xf32> to vector<8x8xf32>
    %cst_6 = arith.constant dense<0.000000e+00> : vector<8x8xf32>
    %11 = tpu.matmul %8, %9, %cst_6 {dimension_numbers = #tpu.dot_dimension_numbers<[1], [1], [0], [0], [0, 0, 1, 0], [], []>} : vector<8x8xf32>, vector<8x8xf32>, vector<8x8xf32> -> vector<8x8xf32>
    %cst_7 = arith.constant dense<0xFF800000> : vector<8xf32>
    %12 = vector.multi_reduction <maximumf>, %11, %cst_7 [1] : vector<8x8xf32> to vector<8xf32>
    %13 = vector.shape_cast %12 : vector<8xf32> to vector<8x1xf32>
    %14 = vector.broadcast %13 : vector<8x1xf32> to vector<8x8xf32>
    %15 = arith.subf %11, %14 : vector<8x8xf32>
    %16 = math.exp %15 : vector<8x8xf32>
    %cst_8 = arith.constant dense<0.000000e+00> : vector<8xf32>
    %17 = vector.multi_reduction <add>, %16, %cst_8 [1] : vector<8x8xf32> to vector<8xf32>
    %18 = vector.shape_cast %17 : vector<8xf32> to vector<8x1xf32>
    %19 = tpu.reciprocal %18 {approx = true} : vector<8x1xf32> -> vector<8x1xf32>
    %20 = vector.broadcast %19 : vector<8x1xf32> to vector<8x8xf32>
    %21 = arith.mulf %16, %20 : vector<8x8xf32>
    %cst_9 = arith.constant dense<0.000000e+00> : vector<8x8xf32>
    %22 = tpu.matmul %21, %10, %cst_9 {dimension_numbers = #tpu.dot_dimension_numbers<[1], [0], [0], [1], [0, 0, 1, 1], [], []>} : vector<8x8xf32>, vector<8x8xf32>, vector<8x8xf32> -> vector<8x8xf32>
    %c0_10 = arith.constant 0 : index
    %c0_11 = arith.constant 0 : index
    %23 = vector.load %arg4[%c0_10, %c0_11] : memref<8x48xf32, #tpu.memory_space<vmem>>, vector<8x48xf32>
    %cst_12 = arith.constant dense<0.000000e+00> : vector<8x48xf32>
    %24 = tpu.matmul %22, %23, %cst_12 {dimension_numbers = #tpu.dot_dimension_numbers<[1], [0], [0], [1], [0, 0, 1, 1], [], []>} : vector<8x8xf32>, vector<8x48xf32>, vector<8x48xf32> -> vector<8x48xf32>
    %c0_13 = arith.constant 0 : index
    %c0_14 = arith.constant 0 : index
    %25 = vector.load %arg5[%c0_13, %c0_14] : memref<1x48xf32, #tpu.memory_space<vmem>>, vector<1x48xf32>
    %26 = vector.broadcast %25 : vector<1x48xf32> to vector<8x48xf32>
    %27 = arith.addf %24, %26 : vector<8x48xf32>
    %c0_15 = arith.constant 0 : index
    %c0_16 = arith.constant 0 : index
    %28 = vector.load %arg6[%c0_15, %c0_16] : memref<8x48xf32, #tpu.memory_space<vmem>>, vector<8x48xf32>
    tpu.vector_store %arg6[%c0_15, %c0_16], %27 {strides = array<i32>} : memref<8x48xf32, #tpu.memory_space<vmem>>, vector<8x48xf32>,
    return
  }
  func.func @transform_0(%arg0: i32) -> (i32, i32) {
    %c0_i32 = arith.constant 0 : i32
    %c0_i32_0 = arith.constant 0 : i32
    %c0_i32_1 = arith.constant 0 : i32
    return %c0_i32, %c0_i32_0 : i32, i32
  }
  func.func @transform_1(%arg0: i32) -> (i32, i32) {
    %c0_i32 = arith.constant 0 : i32
    %c0_i32_0 = arith.constant 0 : i32
    %c0_i32_1 = arith.constant 0 : i32
    return %c0_i32, %c0_i32_0 : i32, i32
  }
  func.func @transform_2(%arg0: i32) -> (i32, i32) {
    %c0_i32 = arith.constant 0 : i32
    %c0_i32_0 = arith.constant 0 : i32
    %c0_i32_1 = arith.constant 0 : i32
    return %c0_i32, %c0_i32_0 : i32, i32
  }
  func.func @transform_3(%arg0: i32) -> (i32, i32) {
    %c0_i32 = arith.constant 0 : i32
    %c0_i32_0 = arith.constant 0 : i32
    %c0_i32_1 = arith.constant 0 : i32
    return %c0_i32, %c0_i32_0 : i32, i32
  }
  func.func @transform_4(%arg0: i32) -> (i32, i32) {
    %c0_i32 = arith.constant 0 : i32
    %c0_i32_0 = arith.constant 0 : i32
    %c0_i32_1 = arith.constant 0 : i32
    return %c0_i32, %c0_i32_0 : i32, i32
  }
  func.func @transform_5(%arg0: i32) -> (i32, i32) {
    %c0_i32 = arith.constant 0 : i32
    %c0_i32_0 = arith.constant 0 : i32
    return %arg0, %c0_i32 : i32, i32
  }
}

</mosaic_0001>

<bundles_post_ra>
// kernel: tpu_custom_call.1
= control target key start
LH: loop header
LB: loop body
LE: loop exit
PB: predicated region body
PF: predicated region fallthrough
CT: control target
= control target key end

     0   :  { %v465_v3 = vmov 0.0|0.0   ;;  %vm466_vm0 = vmmov 0   ;;  %v467_v6 = vmov 0.0   ;;  %s555_s0 = inlined_call_operand.vmem [shape: f32[8,48], index: 0, kind: input, shape index: {}]   ;;  %s556_s1 = inlined_call_operand.vmem [shape: f32[48,24], index: 1, kind: input, shape index: {}]   ;;  %s557_s2 = inlined_call_operand.vmem [shape: f32[1,24], index: 2, kind: input, shape index: {}]   ;;  %s558_s3 = inlined_call_operand.vmem [shape: f32[8,48], index: 3, kind: input, shape index: {}]   ;;  %s559_s4 = inlined_call_operand.vmem [shape: f32[1,48], index: 4, kind: input, shape index: {}]   ;;  %s560_s5 = inlined_call_operand.hbm [shape: f32[8,48], index: 5, kind: output, shape index: {}]  }
   0x1   :  { %v22_v0 = vld [vmem:[%s556_s1] sm:$0xff]  ;;  %v23_v1 = vld [vmem:[%s556_s1 + $0x8] sm:$0xff]  ;;  %v24_v2 = vld [vmem:[%s556_s1 + $0x10] sm:$0xff]  ;;  %422 = vmatprep.subr.bf16.mxu0 %v465_v3  ;;  %404 = vmatprep.mubr.msk.f32.mxu0 %vm466_vm0, %v467_v6 }
   0x2   :  { %v423_v4 = vpack.c.bf16 %v23_v1, %v22_v0  ;;  %v25_v5 = vld [vmem:[%s556_s1 + $0x18] sm:$0xff]  ;;  %407 = vmatprep.subr.mxu1 %v467_v6  ;;  %409 = vmatprep.mubr.msk.f32.mxu1 %vm466_vm0, %v467_v6 }
   0x3   :  { %10 = vsyncpa [#allocation3], 0  ;;  %v426_v7 = vpack.c.bf16 %v25_v5, %v24_v2  ;;  %v26_v8 = vld [vmem:[%s556_s1 + $0x20] sm:$0xff]  ;;  %v27_v9 = vld [vmem:[%s556_s1 + $0x28] sm:$0xff]  ;;  %vm35_vm1 = vcmask 392192   ;;  %s468_s9 = smov 120  }
   0x4   :  { %424 = vmatpush3.bf16.msra.mxu0 %v423_v4  ;;  %v429_v10 = vpack.c.bf16 %v27_v9, %v26_v8  ;;  %v21_v11 = vld [vmem:[%s555_s0] sm:$0xff]  ;;  %vm113_vm2 = vcmask 64512   ;;  %s469_s0 = smov 112   ;;  %s470_s12 = smov [#allocation2]  }
   0x5   :  { %425 = vmatprep.subr.bf16.mxu0 %v465_v3  ;;  %v372_v12 = vld [vmem:[%s557_s2] ss:$0 sm:$0xff]  ;;  %s364_s13 = sshll.u32 %s470_s12, 4  ;;  %s365_s13 = int_to_ptr.vmem [resolvable:$true] %s364_s13 }
   0x6   :  { %v276_v30 = vld [vmem:[%s558_s3] sm:$0xff]  ;;  %s441_s3 = scalar_lea.vmem %s365_s13, 128  ;;  %p446_p1 = scmp.lt.s32.totalorder %s365_s13, %s365_s13 }
   0x7   :  { %v377_v33 = vld [vmem:[%s559_s4] ss:$0 sm:$0xff]  ;;  %p442_p0 = scmp.ne.s32.totalorder %s365_s13, %s441_s3  ;;  %p447_p2 = scmp.lt.s32.totalorder %s441_s3, %s441_s3 }
   0x8   :  { %427 = vmatpush3.bf16.msra.mxu0 %v426_v7 }
   0x9   :  { %428 = vmatprep.subr.bf16.mxu0 %v465_v3  ;;  %p448_p3 = por %p447_p2, %p446_p1 }
   0xb   :  { %p449_p4 = pnand %p448_p3, %p442_p0 }
   0xc   :  { %430 = vmatpush3.bf16.msra.mxu0 %v429_v10 }
   0xf   :  { %405 = vmatmul.mubr.msk.f32.vlgmr.msra.gmra.mrb[0].mxu0 %vm35_vm1, %v21_v11 }
  0xe2   :  { %v105_v13 = vpop.f32.mrb[0].mxu0 }
  0xe3   :  { %v106_v14 = vadd.f32 %v372_v12, %v105_v13  ;;  %v406_v15 = vpop.f32.mrb[1].mxu0 }
  0xe5   :  { %111 = vrot.lane.b32.xlu0 %v106_v14, %s468_s9  ;;  %v109_v17 = vmul.f32 0.35355338, %v106_v14 }
 0x157   :  { %v112_v16 = vpop.permute.xlu0 %111 }
 0x158   :  { %408 = vmatpush3.xpose.msk.msra.mxu1 %vm113_vm2, %v112_v16 }
 0x159   :  { %412 = vmatprep.subr.mxu1 %v467_v6 }
 0x15b   :  { %410 = vmatmul.mubr.msk.f32.vlgmr.msra.gmra.mrb[0].mxu1 %vm113_vm2, %v109_v17 }
 0x15c   :  { %414 = vmatprep.mubr.msk.f32.mxu1 %vm466_vm0, %v467_v6 }
 0x22e   :  { %v185_v18 = vpop.f32.mrb[0].mxu1 }
 0x22f   :  { %v411_v19 = vpop.f32.mrb[1].mxu1  ;;  %v189_v20 = vsel %vm113_vm2, %v185_v18, -inf }
 0x230   :  { %190 = vmax.xlane.f32.xlu0 %v189_v20 }
 0x2bd   :  { %v191_v21 = vpop.xlane.xlu0 %190 }
 0x2be   :  { %v192_v22 = vsub.f32 %v185_v18, %v191_v21 }
 0x2c0   :  { %v193_v23 = vmul.f32 1.442695, %v192_v22 }
 0x2c2   :  { %437 = vpow2.f32 %v193_v23 }
 0x2cc   :  { %v438_v24 = vpop.eup %437 }
 0x2cd   :  { %v195_v25 = vsel %vm113_vm2, %v438_v24, 0.0 }
 0x2ce   :  { %196 = vadd.xlane.f32.xlu1 %v195_v25 }
 0x2df   :  { %200 = vrot.lane.b32.xlu1 %v106_v14, %s469_s0 }
 0x35b   :  { %v197_v26 = vpop.xlane.xlu1 %196 }
 0x35c   :  { %439 = vrcp.f32 %v197_v26 }
 0x35f   :  { %v201_v27 = vpop.permute.xlu1 %200 }
 0x360   :  { %413 = vmatpush3.msra.mxu1 %v201_v27 }
 0x361   :  { %417 = vmatprep.subr.mxu1 %v467_v6 }
 0x366   :  { %v440_v28 = vpop.eup %439 }
 0x367   :  { %v199_v29 = vmul.f32 %v440_v28, %v438_v24 }
 0x369   :  { %415 = vmatmul.mubr.msk.f32.vlgmr.msra.gmra.mrb[2].mxu1 %vm113_vm2, %v199_v29 }
 0x36a   :  { %418 = vmatpush3.msra.mxu1 %v276_v30  ;;  %419 = vmatprep.mubr.msk.f32.mxu1 %vm466_vm0, %v467_v6 }
 0x43c   :  { %v272_v31 = vpop.f32.mrb[2].mxu1 }
 0x43d   :  { %v416_v32 = vpop.f32.mrb[3].mxu1  ;;  %420 = vmatmul.mubr.msk.f32.vlgmr.msra.gmra.mrb[4].mxu1 %vm113_vm2, %v272_v31 }
 0x510   :  { %v353_v34 = vpop.f32.mrb[4].mxu1 }
 0x511   :  { %v354_v35 = vadd.f32 %v377_v33, %v353_v34  ;;  %v421_v36 = vpop.f32.mrb[5].mxu1 }
 0x513   :  { %357 = vst.msk [vmem:[#allocation2] sm:$0xff] %vm35_vm1, %v354_v35 }
 0x514   :  { %452 = shalt.err (!%p449_p4)
}
 0x515   :  { %s453_s16 = scalar_lea.hbm %s560_s5, 128 }
 0x516   :  { %p454_p5 = scmp.ne.s32.totalorder %s560_s5, %s453_s16  ;;  %p457_p6 = scmp.lt.u32.totalorder %s453_s16, %s560_s5 }
 0x518   :  { %p459_p7 = pnand %p457_p6, %p454_p5 }
 0x51a   :  { %462 = shalt.err (!%p459_p7)
}
 0x51b   :  { %367 = dma.vmem_to_hbm [thread:$0]  %s365_s13, 128, %s560_s5, [#allocation3]  }
 0x51c   :  { %463 = dma.done.wait [#allocation3], 128  }
 0x51d   :  { %464 = vsyncadd [#allocation3], 4294967168 }
 0x51e   :  { %371 = vsyncpa [#allocation3], 1 }

</bundles_post_ra>
